<compile_context>
chip_gen: v5e
topology: v5e:2x2
jax: 0.10.0
libtpu: 0.0.40
codegen_flags: <defaults>
</compile_context>

<pallas_src>
import functools

import jax
import jax.numpy as jnp
from jax.experimental import pallas as pl
from jax.experimental.pallas import tpu as pltpu

_LANE = 128
_TARGET_BLOCK_BYTES = 4 * 1024 * 1024    # per-input block; 2 inputs x 2 bufs = 16 MiB
_VMEM_LIMIT_BYTES = 40 * 1024 * 1024     # < 64 MiB (v7x per-TC), > v5e's 16 MiB default


def _round_up(a, b):
    return ((a + b - 1) // b) * b


def _num_core_splits():
    """2 on two-TensorCore parts (v7x family); 1 on single-TC v5e/v6e."""
    try:
        kind = jax.devices()[0].device_kind.lower()
    except Exception:
        return 1
    return 2 if ("v7" in kind or "tpu7" in kind) else 1


def _mse_partial_kernel(x_ref, y_ref, o_ref, *, block_rows, blocks_per_core,
                        valid_rows, needs_mask):
    """Accumulate per-lane partial sums of (x - y)^2 into the (8, 128) o_ref."""
    i = pl.program_id(1)

    @pl.when(i == 0)
    def _():
        o_ref[...] = jnp.zeros_like(o_ref)

    d = x_ref[...].astype(jnp.float32) - y_ref[...].astype(jnp.float32)
    sq = d * d

    def accumulate(vals):
        # Reduce (block_rows, 128) -> (8, 128) with pure VPU adds (VALU has
        # plenty of slack in this HBM-bound kernel); accumulator stays tiny.
        o_ref[...] += jnp.sum(vals.reshape(block_rows // 8, 8, _LANE), axis=0)

    if needs_mask:
        # Logical (unclamped) start row of this grid step.  Rows past
        # `valid_rows` (ragged tail of the last block, or duplicate clamped
        # blocks on a second core split) contain garbage and are zeroed before
        # accumulation.  NOTE: jnp.where is a select, so the garbage never
        # feeds non-selecting arithmetic; keep it that way.
        c = pl.program_id(0)
        row0 = (c * blocks_per_core + i) * block_rows
        is_full = row0 + block_rows <= valid_rows

        @pl.when(is_full)
        def _():
            accumulate(sq)

        @pl.when(jnp.logical_not(is_full))
        def _():
            row_ids = row0 + jax.lax.broadcasted_iota(
                jnp.int32, (block_rows, _LANE), 0)
            accumulate(jnp.where(row_ids < valid_rows, sq, 0.0))
    else:
        accumulate(sq)


def _mse_sum_2d(x2d, y2d):
    """Sum of (x - y)^2 over a (rows, 128) slab via a streaming Pallas reduce."""
    rows = x2d.shape[0]
    ix = jnp.dtype(x2d.dtype).itemsize
    iy = jnp.dtype(y2d.dtype).itemsize
    max_itemsize = max(ix, iy)
    # Sublane granularity matching the narrowest dtype's packing
    # (f32: 8, bf16: 16, i8: 32).
    packing = max(1, 4 // min(ix, iy))
    sub = 8 * packing

    target_rows = max(sub, _TARGET_BLOCK_BYTES // (_LANE * max_itemsize))
    target_rows = _round_up(target_rows, sub)
    block_rows = min(target_rows, _round_up(rows, sub))

    num_blocks = pl.cdiv(rows, block_rows)
    splits = max(1, min(_num_core_splits(), num_blocks))
    blocks_per_core = pl.cdiv(num_blocks, splits)
    needs_mask = (splits * blocks_per_core * block_rows) != rows

    def in_map(c, i):
        # Clamp so every DMA stays in bounds; duplicate / overhanging blocks
        # are masked to zero inside the kernel before accumulation.
        return (jnp.minimum(c * blocks_per_core + i, num_blocks - 1), 0)

    kernel = functools.partial(
        _mse_partial_kernel,
        block_rows=block_rows,
        blocks_per_core=blocks_per_core,
        valid_rows=rows,
        needs_mask=needs_mask,
    )

    n_elems = rows * _LANE
    cost = pl.CostEstimate(
        flops=3 * n_elems,
        transcendentals=0,
        bytes_accessed=n_elems * (ix + iy) + splits * 8 * _LANE * 4,
    )

    partials = pl.pallas_call(
        kernel,
        out_shape=jax.ShapeDtypeStruct((splits * 8, _LANE), jnp.float32),
        grid_spec=pl.GridSpec(
            grid=(splits, blocks_per_core),
            in_specs=[
                pl.BlockSpec((block_rows, _LANE), in_map),
                pl.BlockSpec((block_rows, _LANE), in_map),
            ],
            out_specs=pl.BlockSpec((8, _LANE), lambda c, i: (c, 0)),
        ),
        compiler_params=pltpu.CompilerParams(
            dimension_semantics=("parallel", "arbitrary"),
            vmem_limit_bytes=_VMEM_LIMIT_BYTES,
        ),
        cost_estimate=cost,
    )(x2d, y2d)

    return jnp.sum(partials)


@jax.jit
def _weighted_mse(logits, targets, w):
    """w * mean((logits - targets)^2) over all elements (== w * nn.MSELoss())."""
    assert logits.shape == targets.shape, "MSE requires matching shapes"
    n = logits.size
    x = logits.reshape(-1)
    y = targets.reshape(-1)
    rows = n // _LANE
    tail = n - rows * _LANE

    total = jnp.float32(0.0)
    if rows > 0:
        x2 = x[: rows * _LANE].reshape(rows, _LANE)
        y2 = y[: rows * _LANE].reshape(rows, _LANE)
        total = total + _mse_sum_2d(x2, y2)
    if tail > 0:
        # Tiny ragged tail (< 128 elements): fused XLA ops instead of padding
        # (a jnp.pad would re-materialize the whole operand in HBM).
        dx = x[rows * _LANE:].astype(jnp.float32) - y[rows * _LANE:].astype(jnp.float32)
        total = total + jnp.sum(dx * dx)

    # NOTE: f32 count; for n > 2^24 this rounds slightly (acceptable for a loss).
    return total * (w.astype(jnp.float32) / jnp.float32(n))


class TotalLoss:
    """JAX/Pallas port of the PyTorch TotalLoss module (forward only)."""

    def __init__(self, loss_param, num_samples_per_classes=None, cuda_id=None):
        self.loss_param = loss_param
        self.loss_types = list(loss_param.keys())

    def __call__(self, logits, targets, emb=None, emb_norm=None, step=None,
                 summary_writer=None):
        # TODO(synk): the reference module only implements the 'MSE' branch;
        # no other loss types exist in the spec, so nothing else is ported.
        total_loss = jnp.float32(0.0)
        if 'MSE' in self.loss_types:
            w = jnp.float32(self.loss_param['MSE']['w'])
            total_loss = total_loss + _weighted_mse(logits, targets, w)
        return total_loss


if __name__ == "__main__":
    key = jax.random.PRNGKey(0)
    k1, k2 = jax.random.split(key)

    # Small NCHW regression-style tensors (batch=2, channels=4, spatial=16).
    logits = jax.random.normal(k1, (2, 4, 16, 16), dtype=jnp.float32)
    targets = jax.random.normal(k2, (2, 4, 16, 16), dtype=jnp.float32)

    loss_param = {'MSE': {'w': 0.5}}
    loss_fn = TotalLoss(loss_param, num_samples_per_classes=None, cuda_id=0)

    total = loss_fn(logits, targets)
    total = jax.block_until_ready(total)

    # Sanity check against pure-JAX reference (same semantics as nn.MSELoss).
    ref = jnp.float32(loss_param['MSE']['w']) * jnp.mean((logits - targets) ** 2)
    assert jnp.allclose(total, ref, rtol=1e-5, atol=1e-6), (total, ref)

    print("KERNEL_OK")
</pallas_src>

<mosaic_0001>
module attributes {stable_mosaic.version = 11 : i64} {
  func.func @_mse_partial_kernel(%arg0: i32, %arg1: i32, %arg2: memref<16x128xf32, #tpu.memory_space<vmem>>, %arg3: memref<16x128xf32, #tpu.memory_space<vmem>>, %arg4: memref<8x128xf32, #tpu.memory_space<vmem>>) attributes {dimension_semantics = [#tpu.dimension_semantics<parallel>, #tpu.dimension_semantics<arbitrary>], iteration_bounds = array<i64: 1, 1>, scalar_prefetch = 0 : i64, scratch_operands = 0 : i64, tpu.core_type = #tpu.core_type<tc>, window_params = [{transform_indices = @transform_0, window_bounds = array<i64: 16, 128>}, {transform_indices = @transform_1, window_bounds = array<i64: 16, 128>}, {transform_indices = @transform_2, window_bounds = array<i64: 8, 128>}]} {
    %c0_i32 = arith.constant 0 : i32
    %0 = arith.cmpi eq, %arg1, %c0_i32 : i32
    %1 = arith.extui %0 : i1 to i32
    %c0_i32_0 = arith.constant 0 : i32
    %2 = arith.cmpi ne, %1, %c0_i32_0 : i32
    scf.if %2 {
      %cst_8 = arith.constant 0.000000e+00 : f32
      %12 = vector.broadcast %cst_8 : f32 to vector<8x128xf32>
      %c0_9 = arith.constant 0 : index
      %c0_10 = arith.constant 0 : index
      %13 = vector.load %arg4[%c0_9, %c0_10] : memref<8x128xf32, #tpu.memory_space<vmem>>, vector<8x128xf32>
      tpu.vector_store %arg4[%c0_9, %c0_10], %12 {strides = array<i32>} : memref<8x128xf32, #tpu.memory_space<vmem>>, vector<8x128xf32>,
    } else {
    }
    %c0 = arith.constant 0 : index
    %c0_1 = arith.constant 0 : index
    %3 = vector.load %arg2[%c0, %c0_1] : memref<16x128xf32, #tpu.memory_space<vmem>>, vector<16x128xf32>
    %c0_2 = arith.constant 0 : index
    %c0_3 = arith.constant 0 : index
    %4 = vector.load %arg3[%c0_2, %c0_3] : memref<16x128xf32, #tpu.memory_space<vmem>>, vector<16x128xf32>
    %5 = arith.subf %3, %4 : vector<16x128xf32>
    %6 = arith.mulf %5, %5 : vector<16x128xf32>
    %c0_4 = arith.constant 0 : index
    %c0_5 = arith.constant 0 : index
    %7 = vector.load %arg4[%c0_4, %c0_5] : memref<8x128xf32, #tpu.memory_space<vmem>>, vector<8x128xf32>
    %8 = vector.shape_cast %6 : vector<16x128xf32> to vector<2x8x128xf32>
    %cst = arith.constant dense<0.000000e+00> : vector<8x128xf32>
    %9 = vector.multi_reduction <add>, %8, %cst [0] : vector<2x8x128xf32> to vector<8x128xf32>
    %10 = arith.addf %7, %9 : vector<8x128xf32>
    %c0_6 = arith.constant 0 : index
    %c0_7 = arith.constant 0 : index
    %11 = vector.load %arg4[%c0_6, %c0_7] : memref<8x128xf32, #tpu.memory_space<vmem>>, vector<8x128xf32>
    tpu.vector_store %arg4[%c0_6, %c0_7], %10 {strides = array<i32>} : memref<8x128xf32, #tpu.memory_space<vmem>>, vector<8x128xf32>,
    return
  }
  func.func @transform_0(%arg0: i32, %arg1: i32) -> (i32, i32) {
    %c1_i32 = arith.constant 1 : i32
    %0 = arith.muli %arg0, %c1_i32 : i32
    %1 = arith.addi %0, %arg1 : i32
    %c0_i32 = arith.constant 0 : i32
    %2 = arith.minsi %1, %c0_i32 : i32
    %c0_i32_0 = arith.constant 0 : i32
    %c0_i32_1 = arith.constant 0 : i32
    return %2, %c0_i32_0 : i32, i32
  }
  func.func @transform_1(%arg0: i32, %arg1: i32) -> (i32, i32) {
    %c1_i32 = arith.constant 1 : i32
    %0 = arith.muli %arg0, %c1_i32 : i32
    %1 = arith.addi %0, %arg1 : i32
    %c0_i32 = arith.constant 0 : i32
    %2 = arith.minsi %1, %c0_i32 : i32
    %c0_i32_0 = arith.constant 0 : i32
    %c0_i32_1 = arith.constant 0 : i32
    return %2, %c0_i32_0 : i32, i32
  }
  func.func @transform_2(%arg0: i32, %arg1: i32) -> (i32, i32) {
    %c0_i32 = arith.constant 0 : i32
    %c0_i32_0 = arith.constant 0 : i32
    return %arg0, %c0_i32 : i32, i32
  }
}

</mosaic_0001>

<bundles_post_ra>
// kernel: _weighted_mse.1
= control target key start
LH: loop header
LB: loop body
LE: loop exit
PB: predicated region body
PF: predicated region fallthrough
CT: control target
= control target key end

     0   :  { %s139_s0 = inlined_call_operand.vmem [shape: f32[16,128], index: 0, kind: input, shape index: {}]   ;;  %s140_s1 = inlined_call_operand.vmem [shape: f32[16,128], index: 1, kind: input, shape index: {}]   ;;  %s141_s2 = inlined_call_operand.vmem [shape: f32[8,128], index: 2, kind: output, shape index: {}]  }
   0x1   :  { %v80_v0 = vld [vmem:[%s139_s0] sm:$0xff]  ;;  %v81_v1 = vld [vmem:[%s139_s0 + $0x8] sm:$0xff] }
   0x2   :  { %v82_v2 = vld [vmem:[%s140_s1] sm:$0xff]  ;;  %v83_v3 = vld [vmem:[%s140_s1 + $0x8] sm:$0xff] }
   0x3   :  { %v84_v4 = vsub.f32 %v80_v0, %v82_v2  ;;  %v85_v5 = vsub.f32 %v81_v1, %v83_v3 }
   0x5   :  { %v86_v6 = vmul.f32 %v84_v4, %v84_v4  ;;  %v87_v7 = vmul.f32 %v85_v5, %v85_v5 }
   0x7   :  { %v89_v8 = vadd.f32 %v87_v7, %v86_v6 }
   0x9   :  { %91 = vst [vmem:[%s141_s2] sm:$0xff] %v89_v8 }

</bundles_post_ra>
